<compile_context>
chip_gen: v6e
topology: v6e:2x2x1
jax: 0.10.0
libtpu: 0.0.40
codegen_flags: <defaults>
</compile_context>

<pallas_src>
import functools

import jax
import jax.numpy as jnp
from jax.experimental import pallas as pl
from jax.experimental.pallas import tpu as pltpu


# ---------------------------------------------------------------------------
# Exact (erf-based) GELU, matching torch.nn.GELU() default.
# ---------------------------------------------------------------------------
_ERF_P = 0.3275911
_ERF_A = (0.254829592, -0.284496736, 1.421413741, -1.453152027, 1.061405429)
_INV_SQRT2 = 0.7071067811865476


def _erf(x):
    # Abramowitz & Stegun 7.1.26, odd-extended; only exp/mul/add/where used.
    a = jnp.abs(x)
    t = 1.0 / (1.0 + _ERF_P * a)
    a1, a2, a3, a4, a5 = _ERF_A
    poly = t * (a1 + t * (a2 + t * (a3 + t * (a4 + t * a5))))
    e = 1.0 - poly * jnp.exp(-a * a)
    return jnp.where(x < 0, -e, e)


def _gelu_exact(x):
    return 0.5 * x * (1.0 + _erf(x * _INV_SQRT2))


def _layer_norm_f32(x_ref, gamma_ref, beta_ref, eps):
    x = x_ref[...].astype(jnp.float32)
    mean = jnp.mean(x, axis=-1, keepdims=True)
    cent = x - mean
    var = jnp.mean(cent * cent, axis=-1, keepdims=True)
    normed = cent * jax.lax.rsqrt(var + eps)
    normed = (normed * gamma_ref[...].astype(jnp.float32)
              + beta_ref[...].astype(jnp.float32))
    return x, normed


# ---------------------------------------------------------------------------
# Kernels
# ---------------------------------------------------------------------------
def _ffn_kernel_resident(x_ref, gamma_ref, beta_ref, w1_ref, b1_ref, w2_ref,
                         b2_ref, out_ref, *, eps):
    """Single pass per row tile; full W1/W2 are VMEM-resident (constant maps)."""
    x, normed = _layer_norm_f32(x_ref, gamma_ref, beta_ref, eps)
    h = jnp.dot(normed.astype(w1_ref.dtype), w1_ref[...],
                preferred_element_type=jnp.float32)
    h = _gelu_exact(h + b1_ref[...].astype(jnp.float32))
    y = jnp.dot(h.astype(w2_ref.dtype), w2_ref[...],
                preferred_element_type=jnp.float32)
    out_ref[...] = (y + b2_ref[...].astype(jnp.float32) + x).astype(out_ref.dtype)


def _ffn_kernel_tiled(x_ref, gamma_ref, beta_ref, w1_ref, b1_ref, w2_ref,
                      b2_ref, out_ref, acc_ref, normed_ref, *, eps):
    """Reduction over intermediate-dim tiles; acc init carries residual + b2."""
    i = pl.program_id(1)

    @pl.when(i == 0)
    def _():
        x, normed = _layer_norm_f32(x_ref, gamma_ref, beta_ref, eps)
        normed_ref[...] = normed.astype(normed_ref.dtype)      # weight dtype cache
        acc_ref[...] = x + b2_ref[...].astype(jnp.float32)     # residual + bias

    h = jnp.dot(normed_ref[...], w1_ref[...], preferred_element_type=jnp.float32)
    h = _gelu_exact(h + b1_ref[...].astype(jnp.float32))
    acc_ref[...] += jnp.dot(h.astype(w2_ref.dtype), w2_ref[...],
                            preferred_element_type=jnp.float32)

    @pl.when(i == pl.num_programs(1) - 1)
    def _():
        out_ref[...] = acc_ref[...].astype(out_ref.dtype)       # pure cast + store


# ---------------------------------------------------------------------------
# VMEM-aware tile selection
# ---------------------------------------------------------------------------
def _vmem_capacity_bytes():
    try:
        return int(pltpu.get_tpu_info().vmem_capacity_bytes)
    except Exception:
        return 64 * 1024 * 1024  # conservative (v7x per-TensorCore)


def _select_tiles(M, D, I, x_itemsize, w_itemsize, budget):
    # dtype-aware minimum sublane tile for the row dimension.
    min_tm = 8 if x_itemsize >= 4 else (16 if x_itemsize == 2 else 32)
    tm_cands = [c for c in (1024, 512, 256, 128, 64, 32, 16, 8)
                if c >= min_tm and M % c == 0]
    if not tm_cands:
        tm_cands = [M]

    fixed = 2 * (3 * D + I) * 4  # gamma/beta/b1/b2 (double-buffered, f32 bound)

    # Resident-weights path: W1+W2 DMA'd once, stay in VMEM for whole kernel.
    w_resident = 2 * (2 * D * I) * w_itemsize        # 2x: conservative buffering
    if w_resident <= budget // 2:
        for tm in tm_cands:
            io = 2 * 2 * tm * D * x_itemsize         # x + out, double-buffered
            if io + w_resident + fixed <= budget:
                return tm, None

    # Tiled-reduction path over the intermediate dimension (largest ti first).
    ti_cands = [c for c in (1024, 512, 256, 128) if I % c == 0] or [I]
    for tm in tm_cands:
        for ti in ti_cands:
            io = 2 * 2 * tm * D * x_itemsize
            w = 2 * (2 * D * ti) * w_itemsize
            scratch = tm * D * (4 + w_itemsize)      # f32 acc + weight-dtype cache
            if io + w + scratch + fixed <= budget:
                return tm, ti
    return tm_cands[-1], ti_cands[-1]


# ---------------------------------------------------------------------------
# Wrapper
# ---------------------------------------------------------------------------
def apertis_feed_forward(hidden_states, gamma, beta, w1, b1, w2, b2, *,
                         eps: float = 1e-12, tm=None, ti=None,
                         weight_dtype=None):
    """Pallas equivalent of ApertisFeedForward.forward (eval, dense FFN path).

    hidden_states: (B, S, D).  w1: (D, I), b1: (I,), w2: (I, D), b2: (D,),
    gamma/beta: (D,).  Returns (B, S, D) in the input dtype.
    Pass weight_dtype=jnp.bfloat16 to cast W1/W2 for MXU-native matmuls.
    Passing ti forces the intermediate-dimension-tiled reduction path.
    """
    B, S, D = hidden_states.shape
    I = w1.shape[1]
    M = B * S

    if weight_dtype is not None:
        w1 = w1.astype(weight_dtype)
        w2 = w2.astype(weight_dtype)

    x2 = hidden_states.reshape(M, D)
    gamma2 = gamma.reshape(1, D)
    beta2 = beta.reshape(1, D)
    b1_2 = b1.reshape(1, I)
    b2_2 = b2.reshape(1, D)

    x_itemsize = jnp.dtype(hidden_states.dtype).itemsize
    w_itemsize = jnp.dtype(w1.dtype).itemsize

    capacity = _vmem_capacity_bytes()
    budget = int(capacity * 0.75)
    vmem_limit = min(int(capacity * 0.9), 128 * 1024 * 1024)

    auto_tm, auto_ti = _select_tiles(M, D, I, x_itemsize, w_itemsize, budget)
    if tm is None:
        tm = auto_tm
    if ti is None:
        ti = auto_ti

    assert M % tm == 0, (M, tm)
    assert ti is None or I % ti == 0, (I, ti)

    flops = 4 * M * D * I                 # two matmuls
    transcendentals = M * I               # one exp per GELU element

    if ti is None:
        # ---------------- resident-weights path ----------------
        bytes_accessed = int(2 * M * D * x_itemsize
                             + 2 * D * I * w_itemsize
                             + (3 * D + I) * 4)
        out = pl.pallas_call(
            functools.partial(_ffn_kernel_resident, eps=eps),
            out_shape=jax.ShapeDtypeStruct((M, D), hidden_states.dtype),
            grid_spec=pltpu.PrefetchScalarGridSpec(
                num_scalar_prefetch=0,
                grid=(M // tm,),
                in_specs=[
                    pl.BlockSpec((tm, D), lambda m: (m, 0)),   # x (residual)
                    pl.BlockSpec((1, D), lambda m: (0, 0)),    # gamma
                    pl.BlockSpec((1, D), lambda m: (0, 0)),    # beta
                    pl.BlockSpec((D, I), lambda m: (0, 0)),    # W1 (VMEM-resident)
                    pl.BlockSpec((1, I), lambda m: (0, 0)),    # b1
                    pl.BlockSpec((I, D), lambda m: (0, 0)),    # W2 (VMEM-resident)
                    pl.BlockSpec((1, D), lambda m: (0, 0)),    # b2
                ],
                out_specs=pl.BlockSpec((tm, D), lambda m: (m, 0)),
            ),
            compiler_params=pltpu.CompilerParams(
                dimension_semantics=("parallel",),
                vmem_limit_bytes=vmem_limit,
            ),
            cost_estimate=pl.CostEstimate(
                flops=flops, transcendentals=transcendentals,
                bytes_accessed=bytes_accessed),
        )(x2, gamma2, beta2, w1, b1_2, w2, b2_2)
    else:
        # ---------------- intermediate-tiled reduction path ----------------
        bytes_accessed = int(2 * M * D * x_itemsize
                             + (M // tm) * 2 * D * I * w_itemsize
                             + (3 * D + I) * 4)
        out = pl.pallas_call(
            functools.partial(_ffn_kernel_tiled, eps=eps),
            out_shape=jax.ShapeDtypeStruct((M, D), hidden_states.dtype),
            grid_spec=pltpu.PrefetchScalarGridSpec(
                num_scalar_prefetch=0,
                grid=(M // tm, I // ti),
                in_specs=[
                    pl.BlockSpec((tm, D), lambda m, i: (m, 0)),   # x (residual)
                    pl.BlockSpec((1, D), lambda m, i: (0, 0)),    # gamma
                    pl.BlockSpec((1, D), lambda m, i: (0, 0)),    # beta
                    pl.BlockSpec((D, ti), lambda m, i: (0, i)),   # W1 tile
                    pl.BlockSpec((1, ti), lambda m, i: (0, i)),   # b1 tile
                    pl.BlockSpec((ti, D), lambda m, i: (i, 0)),   # W2 tile
                    pl.BlockSpec((1, D), lambda m, i: (0, 0)),    # b2
                ],
                out_specs=pl.BlockSpec((tm, D), lambda m, i: (m, 0)),
                scratch_shapes=[
                    pltpu.VMEM((tm, D), jnp.float32),   # acc (init: x + b2)
                    pltpu.VMEM((tm, D), w1.dtype),      # LayerNorm cache (weight dtype)
                ],
            ),
            compiler_params=pltpu.CompilerParams(
                dimension_semantics=("parallel", "arbitrary"),
                vmem_limit_bytes=vmem_limit,
            ),
            cost_estimate=pl.CostEstimate(
                flops=flops, transcendentals=transcendentals,
                bytes_accessed=bytes_accessed),
        )(x2, gamma2, beta2, w1, b1_2, w2, b2_2)

    return out.reshape(B, S, D)


# ---------------------------------------------------------------------------
# Pure-JAX reference (ground truth uses exact erf GELU, like torch.nn.GELU()).
# ---------------------------------------------------------------------------
def _reference(hidden_states, gamma, beta, w1, b1, w2, b2, eps=1e-12):
    x = hidden_states.astype(jnp.float32)
    mean = jnp.mean(x, axis=-1, keepdims=True)
    cent = x - mean
    var = jnp.mean(cent * cent, axis=-1, keepdims=True)
    normed = (cent * jax.lax.rsqrt(var + eps) * gamma.astype(jnp.float32)
              + beta.astype(jnp.float32))
    h = normed @ w1.astype(jnp.float32) + b1.astype(jnp.float32)
    h = jax.nn.gelu(h, approximate=False)
    out = h @ w2.astype(jnp.float32) + b2.astype(jnp.float32) + x
    return out.astype(hidden_states.dtype)


if __name__ == "__main__":
    key = jax.random.PRNGKey(0)

    def make_params(k, D, I, dtype=jnp.float32):
        k1, k2, k3, k4, k5, k6 = jax.random.split(k, 6)
        gamma = (1.0 + 0.02 * jax.random.normal(k1, (D,))).astype(dtype)
        beta = (0.02 * jax.random.normal(k2, (D,))).astype(dtype)
        w1 = (0.02 * jax.random.normal(k3, (D, I))).astype(dtype)
        b1 = (0.02 * jax.random.normal(k4, (I,))).astype(dtype)
        w2 = (0.02 * jax.random.normal(k5, (I, D))).astype(dtype)
        b2 = (0.02 * jax.random.normal(k6, (D,))).astype(dtype)
        return gamma, beta, w1, b1, w2, b2

    # Test 1: auto selection -> VMEM-resident weights, single-pass path.
    B, S, D, I = 2, 8, 32, 128   # intermediate = 4 * hidden, as in the config
    kx, kp = jax.random.split(key)
    x = jax.random.normal(kx, (B, S, D), dtype=jnp.float32)
    params = make_params(kp, D, I)
    out = jax.block_until_ready(apertis_feed_forward(x, *params))
    ref = _reference(x, *params)
    assert out.shape == (B, S, D) and out.dtype == x.dtype
    assert jnp.allclose(out, ref, atol=2e-3, rtol=2e-3), (
        float(jnp.max(jnp.abs(out - ref))))

    # Test 2: force the intermediate-tiled reduction path (grid i-dim > 1).
    B2, S2, D2, I2 = 2, 8, 32, 256
    kx2, kp2 = jax.random.split(kp)
    x2 = jax.random.normal(kx2, (B2, S2, D2), dtype=jnp.float32)
    params2 = make_params(kp2, D2, I2)
    out2 = jax.block_until_ready(apertis_feed_forward(x2, *params2, ti=128))
    ref2 = _reference(x2, *params2)
    assert jnp.allclose(out2, ref2, atol=2e-3, rtol=2e-3), (
        float(jnp.max(jnp.abs(out2 - ref2))))

    print("KERNEL_OK")
</pallas_src>

<mosaic_0001>
module attributes {stable_mosaic.version = 11 : i64} {
  func.func @_ffn_kernel_resident(%arg0: i32, %arg1: memref<16x32xf32, #tpu.memory_space<vmem>>, %arg2: memref<1x32xf32, #tpu.memory_space<vmem>>, %arg3: memref<1x32xf32, #tpu.memory_space<vmem>>, %arg4: memref<32x128xf32, #tpu.memory_space<vmem>>, %arg5: memref<1x128xf32, #tpu.memory_space<vmem>>, %arg6: memref<128x32xf32, #tpu.memory_space<vmem>>, %arg7: memref<1x32xf32, #tpu.memory_space<vmem>>, %arg8: memref<16x32xf32, #tpu.memory_space<vmem>>) attributes {dimension_semantics = [#tpu.dimension_semantics<parallel>], iteration_bounds = array<i64: 1>, scalar_prefetch = 0 : i64, scratch_operands = 0 : i64, tpu.core_type = #tpu.core_type<tc>, window_params = [{transform_indices = @transform_0, window_bounds = array<i64: 16, 32>}, {pipeline_mode = #tpu.pipeline_mode<synchronous>, transform_indices = @transform_1, window_bounds = array<i64: 1, 32>}, {pipeline_mode = #tpu.pipeline_mode<synchronous>, transform_indices = @transform_2, window_bounds = array<i64: 1, 32>}, {pipeline_mode = #tpu.pipeline_mode<synchronous>, transform_indices = @transform_3, window_bounds = array<i64: 32, 128>}, {pipeline_mode = #tpu.pipeline_mode<synchronous>, transform_indices = @transform_4, window_bounds = array<i64: 1, 128>}, {pipeline_mode = #tpu.pipeline_mode<synchronous>, transform_indices = @transform_5, window_bounds = array<i64: 128, 32>}, {pipeline_mode = #tpu.pipeline_mode<synchronous>, transform_indices = @transform_6, window_bounds = array<i64: 1, 32>}, {transform_indices = @transform_7, window_bounds = array<i64: 16, 32>}]} {
    %c0 = arith.constant 0 : index
    %c0_0 = arith.constant 0 : index
    %0 = vector.load %arg1[%c0, %c0_0] : memref<16x32xf32, #tpu.memory_space<vmem>>, vector<16x32xf32>
    %cst = arith.constant dense<0.000000e+00> : vector<16xf32>
    %1 = vector.multi_reduction <add>, %0, %cst [1] : vector<16x32xf32> to vector<16xf32>
    %2 = vector.shape_cast %1 : vector<16xf32> to vector<16x1xf32>
    %cst_1 = arith.constant 3.200000e+01 : f32
    %3 = vector.broadcast %cst_1 : f32 to vector<16x1xf32>
    %4 = arith.divf %2, %3 : vector<16x1xf32>
    %5 = vector.broadcast %4 : vector<16x1xf32> to vector<16x32xf32>
    %6 = arith.subf %0, %5 : vector<16x32xf32>
    %7 = arith.mulf %6, %6 : vector<16x32xf32>
    %cst_2 = arith.constant dense<0.000000e+00> : vector<16xf32>
    %8 = vector.multi_reduction <add>, %7, %cst_2 [1] : vector<16x32xf32> to vector<16xf32>
    %9 = vector.shape_cast %8 : vector<16xf32> to vector<16x1xf32>
    %cst_3 = arith.constant 3.200000e+01 : f32
    %10 = vector.broadcast %cst_3 : f32 to vector<16x1xf32>
    %11 = arith.divf %9, %10 : vector<16x1xf32>
    %cst_4 = arith.constant 9.99999996E-13 : f32
    %12 = vector.broadcast %cst_4 : f32 to vector<16x1xf32>
    %13 = arith.addf %11, %12 : vector<16x1xf32>
    %14 = math.rsqrt %13 : vector<16x1xf32>
    %15 = vector.broadcast %14 : vector<16x1xf32> to vector<16x32xf32>
    %16 = arith.mulf %6, %15 : vector<16x32xf32>
    %c0_5 = arith.constant 0 : index
    %c0_6 = arith.constant 0 : index
    %17 = vector.load %arg2[%c0_5, %c0_6] : memref<1x32xf32, #tpu.memory_space<vmem>>, vector<1x32xf32>
    %18 = vector.broadcast %17 : vector<1x32xf32> to vector<16x32xf32>
    %19 = arith.mulf %16, %18 : vector<16x32xf32>
    %c0_7 = arith.constant 0 : index
    %c0_8 = arith.constant 0 : index
    %20 = vector.load %arg3[%c0_7, %c0_8] : memref<1x32xf32, #tpu.memory_space<vmem>>, vector<1x32xf32>
    %21 = vector.broadcast %20 : vector<1x32xf32> to vector<16x32xf32>
    %22 = arith.addf %19, %21 : vector<16x32xf32>
    %c0_9 = arith.constant 0 : index
    %c0_10 = arith.constant 0 : index
    %23 = vector.load %arg4[%c0_9, %c0_10] : memref<32x128xf32, #tpu.memory_space<vmem>>, vector<32x128xf32>
    %cst_11 = arith.constant dense<0.000000e+00> : vector<16x128xf32>
    %24 = tpu.matmul %22, %23, %cst_11 {dimension_numbers = #tpu.dot_dimension_numbers<[1], [0], [0], [1], [0, 0, 1, 1], [], []>} : vector<16x32xf32>, vector<32x128xf32>, vector<16x128xf32> -> vector<16x128xf32>
    %c0_12 = arith.constant 0 : index
    %c0_13 = arith.constant 0 : index
    %25 = vector.load %arg5[%c0_12, %c0_13] : memref<1x128xf32, #tpu.memory_space<vmem>>, vector<1x128xf32>
    %26 = vector.broadcast %25 : vector<1x128xf32> to vector<16x128xf32>
    %27 = arith.addf %24, %26 : vector<16x128xf32>
    %cst_14 = arith.constant 5.000000e-01 : f32
    %28 = vector.broadcast %cst_14 : f32 to vector<16x128xf32>
    %29 = arith.mulf %28, %27 : vector<16x128xf32>
    %cst_15 = arith.constant 0.707106769 : f32
    %30 = vector.broadcast %cst_15 : f32 to vector<16x128xf32>
    %31 = arith.mulf %27, %30 : vector<16x128xf32>
    %32 = math.absf %31 : vector<16x128xf32>
    %cst_16 = arith.constant 0.327591091 : f32
    %33 = vector.broadcast %cst_16 : f32 to vector<16x128xf32>
    %34 = arith.mulf %33, %32 : vector<16x128xf32>
    %cst_17 = arith.constant 1.000000e+00 : f32
    %35 = vector.broadcast %cst_17 : f32 to vector<16x128xf32>
    %36 = arith.addf %35, %34 : vector<16x128xf32>
    %cst_18 = arith.constant 1.000000e+00 : f32
    %37 = vector.broadcast %cst_18 : f32 to vector<16x128xf32>
    %38 = arith.divf %37, %36 : vector<16x128xf32>
    %cst_19 = arith.constant 1.06140542 : f32
    %39 = vector.broadcast %cst_19 : f32 to vector<16x128xf32>
    %40 = arith.mulf %38, %39 : vector<16x128xf32>
    %cst_20 = arith.constant -1.45315206 : f32
    %41 = vector.broadcast %cst_20 : f32 to vector<16x128xf32>
    %42 = arith.addf %41, %40 : vector<16x128xf32>
    %43 = arith.mulf %38, %42 : vector<16x128xf32>
    %cst_21 = arith.constant 1.42141378 : f32
    %44 = vector.broadcast %cst_21 : f32 to vector<16x128xf32>
    %45 = arith.addf %44, %43 : vector<16x128xf32>
    %46 = arith.mulf %38, %45 : vector<16x128xf32>
    %cst_22 = arith.constant -0.284496725 : f32
    %47 = vector.broadcast %cst_22 : f32 to vector<16x128xf32>
    %48 = arith.addf %47, %46 : vector<16x128xf32>
    %49 = arith.mulf %38, %48 : vector<16x128xf32>
    %cst_23 = arith.constant 0.254829586 : f32
    %50 = vector.broadcast %cst_23 : f32 to vector<16x128xf32>
    %51 = arith.addf %50, %49 : vector<16x128xf32>
    %52 = arith.mulf %38, %51 : vector<16x128xf32>
    %cst_24 = arith.constant 0.000000e+00 : f32
    %53 = vector.broadcast %cst_24 : f32 to vector<16x128xf32>
    %54 = arith.subf %53, %32 : vector<16x128xf32>
    %55 = arith.mulf %54, %32 : vector<16x128xf32>
    %56 = math.exp %55 : vector<16x128xf32>
    %57 = arith.mulf %52, %56 : vector<16x128xf32>
    %cst_25 = arith.constant 1.000000e+00 : f32
    %58 = vector.broadcast %cst_25 : f32 to vector<16x128xf32>
    %59 = arith.subf %58, %57 : vector<16x128xf32>
    %cst_26 = arith.constant 0.000000e+00 : f32
    %60 = vector.broadcast %cst_26 : f32 to vector<16x128xf32>
    %61 = arith.cmpf olt, %31, %60 : vector<16x128xf32>
    %cst_27 = arith.constant 0.000000e+00 : f32
    %62 = vector.broadcast %cst_27 : f32 to vector<16x128xf32>
    %63 = arith.subf %62, %59 : vector<16x128xf32>
    %64 = arith.select %61, %63, %59 : vector<16x128xi1>, vector<16x128xf32>
    %cst_28 = arith.constant 1.000000e+00 : f32
    %65 = vector.broadcast %cst_28 : f32 to vector<16x128xf32>
    %66 = arith.addf %65, %64 : vector<16x128xf32>
    %67 = arith.mulf %29, %66 : vector<16x128xf32>
    %c0_29 = arith.constant 0 : index
    %c0_30 = arith.constant 0 : index
    %68 = vector.load %arg6[%c0_29, %c0_30] : memref<128x32xf32, #tpu.memory_space<vmem>>, vector<128x32xf32>
    %cst_31 = arith.constant dense<0.000000e+00> : vector<16x32xf32>
    %69 = tpu.matmul %67, %68, %cst_31 {dimension_numbers = #tpu.dot_dimension_numbers<[1], [0], [0], [1], [0, 0, 1, 1], [], []>} : vector<16x128xf32>, vector<128x32xf32>, vector<16x32xf32> -> vector<16x32xf32>
    %c0_32 = arith.constant 0 : index
    %c0_33 = arith.constant 0 : index
    %70 = vector.load %arg7[%c0_32, %c0_33] : memref<1x32xf32, #tpu.memory_space<vmem>>, vector<1x32xf32>
    %71 = vector.broadcast %70 : vector<1x32xf32> to vector<16x32xf32>
    %72 = arith.addf %69, %71 : vector<16x32xf32>
    %73 = arith.addf %72, %0 : vector<16x32xf32>
    %c0_34 = arith.constant 0 : index
    %c0_35 = arith.constant 0 : index
    %74 = vector.load %arg8[%c0_34, %c0_35] : memref<16x32xf32, #tpu.memory_space<vmem>>, vector<16x32xf32>
    tpu.vector_store %arg8[%c0_34, %c0_35], %73 {strides = array<i32>} : memref<16x32xf32, #tpu.memory_space<vmem>>, vector<16x32xf32>,
    return
  }
  func.func @transform_0(%arg0: i32) -> (i32, i32) {
    %c0_i32 = arith.constant 0 : i32
    %c0_i32_0 = arith.constant 0 : i32
    return %arg0, %c0_i32 : i32, i32
  }
  func.func @transform_1(%arg0: i32) -> (i32, i32) {
    %c0_i32 = arith.constant 0 : i32
    %c0_i32_0 = arith.constant 0 : i32
    %c0_i32_1 = arith.constant 0 : i32
    return %c0_i32, %c0_i32_0 : i32, i32
  }
  func.func @transform_2(%arg0: i32) -> (i32, i32) {
    %c0_i32 = arith.constant 0 : i32
    %c0_i32_0 = arith.constant 0 : i32
    %c0_i32_1 = arith.constant 0 : i32
    return %c0_i32, %c0_i32_0 : i32, i32
  }
  func.func @transform_3(%arg0: i32) -> (i32, i32) {
    %c0_i32 = arith.constant 0 : i32
    %c0_i32_0 = arith.constant 0 : i32
    %c0_i32_1 = arith.constant 0 : i32
    return %c0_i32, %c0_i32_0 : i32, i32
  }
  func.func @transform_4(%arg0: i32) -> (i32, i32) {
    %c0_i32 = arith.constant 0 : i32
    %c0_i32_0 = arith.constant 0 : i32
    %c0_i32_1 = arith.constant 0 : i32
    return %c0_i32, %c0_i32_0 : i32, i32
  }
  func.func @transform_5(%arg0: i32) -> (i32, i32) {
    %c0_i32 = arith.constant 0 : i32
    %c0_i32_0 = arith.constant 0 : i32
    %c0_i32_1 = arith.constant 0 : i32
    return %c0_i32, %c0_i32_0 : i32, i32
  }
  func.func @transform_6(%arg0: i32) -> (i32, i32) {
    %c0_i32 = arith.constant 0 : i32
    %c0_i32_0 = arith.constant 0 : i32
    %c0_i32_1 = arith.constant 0 : i32
    return %c0_i32, %c0_i32_0 : i32, i32
  }
  func.func @transform_7(%arg0: i32) -> (i32, i32) {
    %c0_i32 = arith.constant 0 : i32
    %c0_i32_0 = arith.constant 0 : i32
    return %arg0, %c0_i32 : i32, i32
  }
}

</mosaic_0001>

<bundles_post_ra>
// kernel: tpu_custom_call.1
= control target key start
LH: loop header
LB: loop body
LE: loop exit
PB: predicated region body
PF: predicated region fallthrough
CT: control target
= control target key end

     0   :  { %vm29_vm0 = vcmask 261120   ;;  %s594_s0 = inlined_call_operand.vmem [shape: f32[16,32], index: 0, kind: input, shape index: {}]   ;;  %s595_s1 = inlined_call_operand.vmem [shape: f32[1,32], index: 1, kind: input, shape index: {}]   ;;  %s596_s2 = inlined_call_operand.vmem [shape: f32[1,32], index: 2, kind: input, shape index: {}]   ;;  %s597_s3 = inlined_call_operand.vmem [shape: f32[32,128], index: 3, kind: input, shape index: {}]   ;;  %s598_s4 = inlined_call_operand.vmem [shape: f32[1,128], index: 4, kind: input, shape index: {}]   ;;  %s599_s5 = inlined_call_operand.vmem [shape: f32[128,32], index: 5, kind: input, shape index: {}]   ;;  %s600_s6 = inlined_call_operand.vmem [shape: f32[1,32], index: 6, kind: input, shape index: {}]   ;;  %s601_s7 = inlined_call_operand.hbm [shape: f32[16,32], index: 7, kind: output, shape index: {}]  }
   0x1   :  { %v498_v0 = vld [vmem:[%s594_s0] sm:$0xff]  ;;  %v503_v1 = vld [vmem:[%s594_s0 + $0x8] sm:$0xff] }
   0x2   :  { %12 = vsyncpa [#allocation3], 0  ;;  %v30_v2 = vsel %vm29_vm0, %v498_v0, 0.0  ;;  %v33_v3 = vsel %vm29_vm0, %v503_v1, 0.0  ;;  %v78_v14 = vld [vmem:[%s597_s3 + $0x18] sm:$0xff]  ;;  %v77_v15 = vld [vmem:[%s597_s3 + $0x10] sm:$0xff] }
   0x3   :  { %31 = vadd.xlane.f32.xlu0 %v30_v2  ;;  %369 = vmatprep.subr.mxu0 %v78_v14  ;;  %v76_v16 = vld [vmem:[%s597_s3 + $0x8] sm:$0xff]  ;;  %v75_v17 = vld [vmem:[%s597_s3] sm:$0xff]  ;;  %v236_v34 = vld [vmem:[%s599_s5 + $0x78] sm:$0xff]  ;;  %s452_s20 = smov [#allocation2]  }
   0x4   :  { %370 = vmatpush3.msra.mxu0 %v78_v14  ;;  %v339_v25 = vld [vmem:[%s595_s1] ss:$0 sm:$0xff]  ;;  %v235_v35 = vld [vmem:[%s599_s5 + $0x70] sm:$0xff]  ;;  %380 = vmatprep.subr.mxu1 %v236_v34  ;;  %v234_v36 = vld [vmem:[%s599_s5 + $0x68] sm:$0xff]  ;;  %s328_s21 = sshll.u32 %s452_s20, 4  ;;  %s329_s21 = int_to_ptr.vmem [resolvable:$true] %s328_s21 }
   0x5   :  { %371 = vmatprep.subr.mxu0 %v77_v15  ;;  %v340_v27 = vld [vmem:[%s596_s2] ss:$0 sm:$0xff]  ;;  %381 = vmatpush3.msra.mxu1 %v236_v34  ;;  %v232_v38 = vld [vmem:[%s599_s5 + $0x58] sm:$0xff]  ;;  %v231_v39 = vld [vmem:[%s599_s5 + $0x50] sm:$0xff]  ;;  %s430_s22 = scalar_lea.vmem %s329_s21, 256  ;;  %p435_p1 = scmp.lt.s32.totalorder %s329_s21, %s329_s21 }
   0x6   :  { %372 = vmatpush3.msra.mxu0 %v77_v15  ;;  %382 = vmatprep.subr.mxu1 %v235_v35  ;;  %v233_v37 = vld [vmem:[%s599_s5 + $0x60] sm:$0xff]  ;;  %v230_v40 = vld [vmem:[%s599_s5 + $0x48] sm:$0xff]  ;;  %v228_v42 = vld [vmem:[%s599_s5 + $0x38] sm:$0xff]  ;;  %p431_p0 = scmp.ne.s32.totalorder %s329_s21, %s430_s22  ;;  %p436_p2 = scmp.lt.s32.totalorder %s430_s22, %s430_s22 }
   0x7   :  { %34 = vadd.xlane.f32.xlu0 %v33_v3  ;;  %373 = vmatprep.subr.mxu0 %v76_v16  ;;  %v229_v41 = vld [vmem:[%s599_s5 + $0x40] sm:$0xff]  ;;  %v227_v43 = vld [vmem:[%s599_s5 + $0x30] sm:$0xff]  ;;  %v226_v44 = vld [vmem:[%s599_s5 + $0x28] sm:$0xff] }
   0x8   :  { %374 = vmatpush3.msra.mxu0 %v76_v16  ;;  %383 = vmatpush3.msra.mxu1 %v235_v35  ;;  %v225_v45 = vld [vmem:[%s599_s5 + $0x20] sm:$0xff]  ;;  %v224_v46 = vld [vmem:[%s599_s5 + $0x18] sm:$0xff]  ;;  %v223_v47 = vld [vmem:[%s599_s5 + $0x10] sm:$0xff]  ;;  %p437_p3 = por %p436_p2, %p435_p1 }
   0x9   :  { %375 = vmatprep.subr.mxu0 %v75_v17  ;;  %384 = vmatprep.subr.mxu1 %v234_v36  ;;  %v222_v48 = vld [vmem:[%s599_s5 + $0x8] sm:$0xff]  ;;  %v221_v49 = vld [vmem:[%s599_s5] sm:$0xff] }
   0xa   :  { %376 = vmatpush3.msra.mxu0 %v75_v17  ;;  %385 = vmatpush3.msra.mxu1 %v234_v36  ;;  %v341_v50 = vld [vmem:[%s598_s4] ss:$0 sm:$0xff]  ;;  %p438_p4 = pnand %p437_p3, %p431_p0 }
   0xb   :  { %386 = vmatprep.subr.mxu1 %v233_v37 }
   0xc   :  { %387 = vmatpush3.msra.mxu1 %v233_v37 }
   0xd   :  { %388 = vmatprep.subr.mxu1 %v232_v38 }
   0xe   :  { %389 = vmatpush3.msra.mxu1 %v232_v38 }
   0xf   :  { %390 = vmatprep.subr.mxu1 %v231_v39 }
  0x10   :  { %391 = vmatpush3.msra.mxu1 %v231_v39 }
  0x11   :  { %392 = vmatprep.subr.mxu1 %v230_v40 }
  0x12   :  { %393 = vmatpush3.msra.mxu1 %v230_v40 }
  0x13   :  { %394 = vmatprep.subr.mxu1 %v229_v41 }
  0x14   :  { %395 = vmatpush3.msra.mxu1 %v229_v41 }
  0x15   :  { %396 = vmatprep.subr.mxu1 %v228_v42 }
  0x16   :  { %397 = vmatpush3.msra.mxu1 %v228_v42 }
  0x17   :  { %398 = vmatprep.subr.mxu1 %v227_v43 }
  0x18   :  { %399 = vmatpush3.msra.mxu1 %v227_v43  ;;  %v344_v43 = vld [vmem:[%s600_s6] ss:$0 sm:$0xff] }
  0x19   :  { %400 = vmatprep.subr.mxu1 %v226_v44 }
  0x1a   :  { %401 = vmatpush3.msra.mxu1 %v226_v44 }
  0x1b   :  { %402 = vmatprep.subr.mxu1 %v225_v45 }
  0x1c   :  { %403 = vmatpush3.msra.mxu1 %v225_v45 }
  0x1d   :  { %404 = vmatprep.subr.mxu1 %v224_v46 }
  0x1e   :  { %405 = vmatpush3.msra.mxu1 %v224_v46 }
  0x1f   :  { %406 = vmatprep.subr.mxu1 %v223_v47 }
  0x20   :  { %407 = vmatpush3.msra.mxu1 %v223_v47 }
  0x21   :  { %408 = vmatprep.subr.mxu1 %v222_v48 }
  0x22   :  { %409 = vmatpush3.msra.mxu1 %v222_v48 }
  0x23   :  { %410 = vmatprep.subr.mxu1 %v221_v49 }
  0x24   :  { %411 = vmatpush3.msra.mxu1 %v221_v49 }
  0x8c   :  { %v32_v4 = vpop.xlane.xlu0 %31 }
  0x8d   :  { %v37_v5 = vmul.f32 0.03125, %v32_v4 }
  0x8f   :  { %v39_v6 = vsub.f32 %v498_v0, %v37_v5 }
  0x90   :  { %v35_v7 = vpop.xlane.xlu0 %34 }
  0x91   :  { %v38_v8 = vmul.f32 0.03125, %v35_v7  ;;  %v41_v9 = vmul.f32 %v39_v6, %v39_v6 }
  0x93   :  { %v40_v10 = vsub.f32 %v503_v1, %v38_v8  ;;  %v43_v11 = vsel %vm29_vm0, %v41_v9, 0.0 }
  0x94   :  { %44 = vadd.xlane.f32.xlu1 %v43_v11 }
  0x95   :  { %v42_v12 = vmul.f32 %v40_v10, %v40_v10 }
  0x97   :  { %v46_v13 = vsel %vm29_vm0, %v42_v12, 0.0 }
  0x98   :  { %47 = vadd.xlane.f32.xlu1 %v46_v13 }
 0x11d   :  { %v45_v18 = vpop.xlane.xlu1 %44 }
 0x11e   :  { %v49_v19 = vmul.f32 0.03125, %v45_v18 }
 0x120   :  { %v51_v20 = vadd.f32 1e-12, %v49_v19 }
 0x121   :  { %v48_v21 = vpop.xlane.xlu1 %47 }
 0x122   :  { %418 = vrsqrt.f32 %v51_v20  ;;  %v50_v22 = vmul.f32 0.03125, %v48_v21 }
 0x124   :  { %v52_v23 = vadd.f32 1e-12, %v50_v22 }
 0x126   :  { %420 = vrsqrt.f32 %v52_v23 }
 0x12f   :  { %v419_v24 = vpop.eup %418 }
 0x130   :  { %v55_v26 = vmul.f32 %v419_v24, %v39_v6 }
 0x132   :  { %v64_v28 = vmul.f32 %v339_v25, %v55_v26 }
 0x133   :  { %v421_v29 = vpop.eup %420 }
 0x134   :  { %v56_v30 = vmul.f32 %v421_v29, %v40_v10  ;;  %v73_v31 = vadd.f32 %v340_v27, %v64_v28 }
 0x136   :  { %v65_v32 = vmul.f32 %v339_v25, %v56_v30  ;;  %377 = vmatprep.mubr.msk.f32.mxu0 %vm29_vm0, %v73_v31 }
 0x138   :  { %v74_v33 = vadd.f32 %v340_v27, %v65_v32 }
 0x13a   :  { %378 = vmatmul.mubr.msk.f32.vlgmr.msra.gmra.mxu0 %vm29_vm0, %v74_v33 }
 0x1fa   :  { %v379_v51 = vpop.f32.mrf.mxu0 }
 0x1fb   :  { %v164_v52 = vadd.f32 %v379_v51, %v341_v50 }
 0x1fc   :  { %v158_v53 = vpop.f32.mrf.mxu0 }
 0x1fd   :  { %v170_v54 = vmul.f32 0.70710677, %v164_v52  ;;  %v159_v55 = vadd.f32 %v341_v50, %v158_v53  ;;  %v168_v40 = vmul.f32 0.5, %v164_v52 }
 0x1ff   :  { %v172_v56 = vand.u32 2147483647, %v170_v54  ;;  %v169_v57 = vmul.f32 0.70710677, %v159_v55  ;;  %vm212_vm1 = vcmp.lt.f32.partialorder %v170_v54, 0.0  ;;  %v167_v38 = vmul.f32 0.5, %v159_v55 }
 0x201   :  { %v174_v58 = vmul.f32 0.3275911, %v172_v56  ;;  %v171_v59 = vand.u32 2147483647, %v169_v57  ;;  %v200_v63 = vsub.f32 0.0, %v172_v56  ;;  %vm211_vm2 = vcmp.lt.f32.partialorder %v169_v57, 0.0 }
 0x203   :  { %v176_v60 = vadd.f32 1.0, %v174_v58  ;;  %v173_v61 = vmul.f32 0.3275911, %v171_v59  ;;  %v199_v2 = vsub.f32 0.0, %v171_v59  ;;  %v202_v3 = vmul.f32 %v200_v63, %v172_v56 }
 0x205   :  { %422 = vrcp.f32 %v176_v60  ;;  %v175_v62 = vadd.f32 1.0, %v173_v61  ;;  %v201_v5 = vmul.f32 %v199_v2, %v171_v59  ;;  %v205_v6 = vmul.f32 1.442695, %v202_v3 }
 0x207   :  { %424 = vrcp.f32 %v175_v62  ;;  %v203_v10 = vmul.f32 1.442695, %v201_v5 }
 0x208   :  { %426 = vpow2.f32 %v205_v6 }
 0x209   :  { %428 = vpow2.f32 %v203_v10 }
 0x212   :  { %v423_v4 = vpop.eup %422 }
 0x213   :  { %v182_v7 = vmul.f32 1.0614054, %v423_v4 }
 0x214   :  { %v425_v8 = vpop.eup %424 }
 0x215   :  { %v184_v9 = vadd.f32 -1.4531521, %v182_v7  ;;  %v181_v11 = vmul.f32 1.0614054, %v425_v8  ;;  %v427_v25 = vpop.eup %426 }
 0x216   :  { %v429_v29 = vpop.eup %428 }
 0x217   :  { %v186_v12 = vmul.f32 %v423_v4, %v184_v9  ;;  %v183_v13 = vadd.f32 -1.4531521, %v181_v11 }
 0x219   :  { %v188_v14 = vadd.f32 1.4214138, %v186_v12  ;;  %v185_v15 = vmul.f32 %v425_v8, %v183_v13 }
 0x21b   :  { %v190_v16 = vmul.f32 %v423_v4, %v188_v14  ;;  %v187_v17 = vadd.f32 1.4214138, %v185_v15 }
 0x21d   :  { %v192_v18 = vadd.f32 -0.28449672, %v190_v16  ;;  %v189_v19 = vmul.f32 %v425_v8, %v187_v17 }
 0x21f   :  { %v194_v20 = vmul.f32 %v423_v4, %v192_v18  ;;  %v191_v21 = vadd.f32 -0.28449672, %v189_v19 }
 0x221   :  { %v196_v22 = vadd.f32 0.2548296, %v194_v20  ;;  %v193_v23 = vmul.f32 %v425_v8, %v191_v21 }
 0x223   :  { %v198_v24 = vmul.f32 %v423_v4, %v196_v22  ;;  %v195_v26 = vadd.f32 0.2548296, %v193_v23 }
 0x225   :  { %v208_v27 = vmul.f32 %v427_v25, %v198_v24  ;;  %v197_v28 = vmul.f32 %v425_v8, %v195_v26 }
 0x227   :  { %v210_v30 = vsub.f32 1.0, %v208_v27  ;;  %v207_v31 = vmul.f32 %v429_v29, %v197_v28 }
 0x229   :  { %v214_v32 = vsub.f32 0.0, %v210_v30  ;;  %v209_v33 = vsub.f32 1.0, %v207_v31 }
 0x22b   :  { %v216_v34 = vsel %vm212_vm1, %v214_v32, %v210_v30  ;;  %v213_v35 = vsub.f32 0.0, %v209_v33 }
 0x22c   :  { %v218_v37 = vadd.f32 1.0, %v216_v34 }
 0x22d   :  { %v215_v36 = vsel %vm211_vm2, %v213_v35, %v209_v33 }
 0x22e   :  { %v217_v39 = vadd.f32 1.0, %v215_v36  ;;  %v220_v42 = vmul.f32 %v218_v37, %v168_v40 }
 0x230   :  { %v219_v41 = vmul.f32 %v217_v39, %v167_v38 }
 0x232   :  { %412 = vmatprep.mubr.f32.mxu1 %v219_v41 }
 0x233   :  { %413 = vmatmul.mubr.f32.vlgmr.msra.gmra.mxu1 %v220_v42 }
 0x2f3   :  { %v414_v44 = vpop.f32.mrf.mxu1 }
 0x2f4   :  { %v316_v45 = vadd.f32 %v414_v44, %v344_v43 }
 0x2f5   :  { %v310_v46 = vpop.f32.mrf.mxu1 }
 0x2f6   :  { %v320_v47 = vadd.f32 %v316_v45, %v503_v1  ;;  %v311_v48 = vadd.f32 %v344_v43, %v310_v46 }
 0x2f8   :  { %322 = vst.msk [vmem:[#allocation2 + $0x8] sm:$0xff] %vm29_vm0, %v320_v47  ;;  %v319_v49 = vadd.f32 %v311_v48, %v498_v0 }
 0x2fa   :  { %321 = vst.msk [vmem:[#allocation2] sm:$0xff] %vm29_vm0, %v319_v49 }
 0x2fb   :  { %441 = shalt.err (!%p438_p4)
}
 0x2fc   :  { %s453_s6 = smov 128   ;;  %s454_s23 = smov 8  }
 0x2fd   :  { %334 = dma.vmem_to_hbm [thread:$0]  %s329_s21, 256, %s601_s7, [#allocation3], %s453_s6, %s453_s6, %s454_s23  }
 0x2fe   :  { %450 = dma.done.wait [#allocation3], 256  }
 0x2ff   :  { %451 = vsyncadd [#allocation3], 4294967040 }
 0x300   :  { %338 = vsyncpa [#allocation3], 1 }

</bundles_post_ra>
